<compile_context>
chip_gen: v7x
topology: tpu7x:2x2x1
jax: 0.10.0
libtpu: 0.0.40
codegen_flags: <defaults>
</compile_context>

<pallas_src>
import jax
import jax.numpy as jnp
from jax.experimental import pallas as pl
from jax.experimental.pallas import tpu as pltpu

ATOMS = 51
N_ACTIONS = 4
HIDDEN = 512
HEAD_N = N_ACTIONS * ATOMS                        # 204
HEAD_PAD = ((HEAD_N + 127) // 128) * 128          # 256 (lane-dense)
MAX_TILE_B = 1024                                 # ~6 MiB VMEM per step, fits everywhere


def dueling_kernel(x_ref, w1_ref, b1_ref, wh_ref, bh_ref, out_ref):
    # fc1 + ReLU: bf16 x bf16 -> f32 accumulate on the MXU, f32 epilogue.
    flat = jnp.dot(x_ref[...], w1_ref[...], preferred_element_type=jnp.float32)
    flat = jnp.maximum(flat + b1_ref[...], 0.0)            # (TILE_B, 512) f32

    # Fused (V + A - mean_a A) head, already folded into wh/bh.
    flat = flat.astype(wh_ref.dtype)                       # back to bf16 for MXU
    out = jnp.dot(flat, wh_ref[...], preferred_element_type=jnp.float32)
    out_ref[...] = (out + bh_ref[...]).astype(out_ref.dtype)   # (TILE_B, 256)


def _round_up(x, m):
    return ((x + m - 1) // m) * m


def fold_dueling_head(wv, bv, wa, ba):
    """Fold V head + dueling combine into the advantage head (exact, linear)."""
    h = wa.shape[0]
    wa3 = wa.reshape(h, N_ACTIONS, ATOMS)
    wh = (wa3 - wa3.mean(axis=1, keepdims=True)
          + wv.reshape(h, 1, ATOMS)).reshape(h, HEAD_N)
    ba3 = ba.reshape(1, N_ACTIONS, ATOMS)
    bh = (ba3 - ba3.mean(axis=1, keepdims=True)
          + bv.reshape(1, 1, ATOMS)).reshape(1, HEAD_N)
    # Zero-pad to 256 lanes so padded output columns are garbage-free.
    wh = jnp.pad(wh, ((0, 0), (0, HEAD_PAD - HEAD_N)))
    bh = jnp.pad(bh, ((0, 0), (0, HEAD_PAD - HEAD_N)))
    return wh, bh


def prepare_params(params, *, weight_dtype=jnp.bfloat16):
    """One-time (weight-load time) fold + cast + pad.

    Call once and cache the result; every forward then only DMAs the already
    folded bf16 weights instead of re-reading ~0.7 MB of f32 params and
    re-running the fold/casts as separate XLA ops per call.
    """
    w1, b1, wv, bv, wa, ba = params
    in_features = w1.shape[0]
    k_pad = _round_up(in_features, 128)          # lane-align the fc1 K dim
    if k_pad != in_features:
        w1 = jnp.pad(w1, ((0, k_pad - in_features), (0, 0)))
    wh, bh = fold_dueling_head(wv, bv, wa, ba)
    return {
        "w1": w1.astype(weight_dtype),
        "b1": b1.reshape(1, HIDDEN).astype(jnp.float32),
        "wh": wh.astype(weight_dtype),
        "bh": bh.astype(jnp.float32),
        "in_features": in_features,
        "k_pad": k_pad,
        "weight_dtype": jnp.dtype(weight_dtype),
    }


def _choose_batch_tiling(batch, tile_b_max=MAX_TILE_B):
    """Pick (tile_b, padded_b).

    * multiples of 16 (bf16 packs 16 rows per sublane group),
    * >= 2 grid steps when batch >= 32 so the 'parallel' batch axis actually
      shards across v7x's two TensorCores,
    * tile sized ~= padded_b / n_tiles so batch-padding waste is bounded
      (no full-tile round-up of dead rows).
    """
    padded = _round_up(max(batch, 1), 16)
    if padded < 32:
        return padded, padded
    n_tiles = max(2, -(-padded // tile_b_max))
    tile_b = _round_up(-(-padded // n_tiles), 16)
    padded_b = _round_up(padded, tile_b)
    return tile_b, padded_b


def dueling_forward(state, prepared, *, out_dtype=jnp.float32):
    """Dueling DQN forward. Returns (B, n_actions, atoms) in `out_dtype`.

    NOTE(v6e): the kernel is HBM-bound there and the f32 output is the
    dominant HBM term; pass out_dtype=jnp.bfloat16 if the consumer allows.
    """
    batch, in_features = state.shape
    assert in_features == prepared["in_features"], "state dim != prepared params"
    k_pad = prepared["k_pad"]
    weight_dtype = prepared["weight_dtype"]
    w1c, b1c, whc, bhc = (prepared["w1"], prepared["b1"],
                          prepared["wh"], prepared["bh"])

    x = state.astype(weight_dtype)
    tile_b, padded_b = _choose_batch_tiling(batch)
    pad_rows = padded_b - batch
    pad_cols = k_pad - in_features
    if pad_rows or pad_cols:
        x = jnp.pad(x, ((0, pad_rows), (0, pad_cols)))
    grid = (padded_b // tile_b,)

    itemsize_w = weight_dtype.itemsize
    flops = 2 * padded_b * (k_pad * HIDDEN + HIDDEN * HEAD_PAD)
    bytes_accessed = (x.size * itemsize_w
                      + w1c.size * itemsize_w + whc.size * itemsize_w
                      + b1c.size * 4 + bhc.size * 4
                      + padded_b * HEAD_PAD * jnp.dtype(out_dtype).itemsize)

    out = pl.pallas_call(
        dueling_kernel,
        out_shape=jax.ShapeDtypeStruct((padded_b, HEAD_PAD), out_dtype),
        grid_spec=pltpu.PrefetchScalarGridSpec(
            num_scalar_prefetch=0,
            grid=grid,
            in_specs=[
                pl.BlockSpec((tile_b, k_pad), lambda i: (i, 0)),     # x
                # Constant index maps -> weights/biases stay VMEM-resident
                # across the batch grid (only a few hundred KiB in bf16).
                # TODO(synk): pl.Buffered(1) pipeline_mode would halve their
                # already-tiny double-buffer footprint on v7x; skipped.
                pl.BlockSpec((k_pad, HIDDEN), lambda i: (0, 0)),     # W1
                pl.BlockSpec((1, HIDDEN), lambda i: (0, 0)),         # b1
                pl.BlockSpec((HIDDEN, HEAD_PAD), lambda i: (0, 0)),  # W_head
                pl.BlockSpec((1, HEAD_PAD), lambda i: (0, 0)),       # b_head
            ],
            out_specs=pl.BlockSpec((tile_b, HEAD_PAD), lambda i: (i, 0)),
        ),
        compiler_params=pltpu.CompilerParams(
            dimension_semantics=("parallel",),     # megacore sharding on v7x
            vmem_limit_bytes=32 * 1024 * 1024,
        ),
        cost_estimate=pl.CostEstimate(
            flops=flops, transcendentals=0, bytes_accessed=bytes_accessed),
    )(x, w1c, b1c, whc, bhc)

    # Drop batch padding + lane padding, then the PyTorch-style .view().
    return out[:batch, :HEAD_N].reshape(batch, N_ACTIONS, ATOMS)


def init_params(key, in_features):
    """PyTorch nn.Linear-style init: U(-1/sqrt(fan_in), +1/sqrt(fan_in))."""
    def linear(k, fan_in, fan_out):
        kw, kb = jax.random.split(k)
        bound = 1.0 / jnp.sqrt(jnp.float32(fan_in))
        w = jax.random.uniform(kw, (fan_in, fan_out), jnp.float32, -bound, bound)
        b = jax.random.uniform(kb, (1, fan_out), jnp.float32, -bound, bound)
        return w, b

    k1, k2, k3 = jax.random.split(key, 3)
    w1, b1 = linear(k1, in_features, HIDDEN)
    wv, bv = linear(k2, HIDDEN, 1 * ATOMS)
    wa, ba = linear(k3, HIDDEN, N_ACTIONS * ATOMS)
    return (w1, b1, wv, bv, wa, ba)


def reference_forward(state, params):
    """Pure-JAX f32 reference mirroring the PyTorch forward()."""
    w1, b1, wv, bv, wa, ba = params
    batch = state.shape[0]
    flat = jax.nn.relu(state @ w1 + b1)
    v = (flat @ wv + bv).reshape(batch, 1, ATOMS)
    a = (flat @ wa + ba).reshape(batch, N_ACTIONS, ATOMS)
    adv_mean = a.mean(axis=1, keepdims=True)
    return v + (a - adv_mean)


if __name__ == "__main__":
    key = jax.random.PRNGKey(0)
    k_params, k_x1, k_x2 = jax.random.split(key, 3)

    in_features = 128  # input_dims = (128,)
    params = init_params(k_params, in_features)
    prepared = prepare_params(params)   # one-time fold + bf16 cast + padding

    # Small single-tile case (grid = 1).
    state = jax.random.normal(k_x1, (8, in_features), jnp.float32)
    out = jax.block_until_ready(dueling_forward(state, prepared))
    ref = reference_forward(state, params)
    assert out.shape == (8, N_ACTIONS, ATOMS)
    assert jnp.allclose(out, ref, atol=2e-2, rtol=2e-2), "mismatch vs reference (B=8)"

    # Multi-tile case exercising the >=2-step 'parallel' grid + row padding.
    state2 = jax.random.normal(k_x2, (40, in_features), jnp.float32)
    out2 = jax.block_until_ready(dueling_forward(state2, prepared))
    ref2 = reference_forward(state2, params)
    assert out2.shape == (40, N_ACTIONS, ATOMS)
    assert jnp.allclose(out2, ref2, atol=2e-2, rtol=2e-2), "mismatch vs reference (B=40)"

    print("KERNEL_OK")
</pallas_src>

<mosaic_0001>
module attributes {stable_mosaic.version = 11 : i64} {
  func.func @dueling_kernel(%arg0: i32, %arg1: memref<16x128xbf16, #tpu.memory_space<vmem>>, %arg2: memref<128x512xbf16, #tpu.memory_space<vmem>>, %arg3: memref<1x512xf32, #tpu.memory_space<vmem>>, %arg4: memref<512x256xbf16, #tpu.memory_space<vmem>>, %arg5: memref<1x256xf32, #tpu.memory_space<vmem>>, %arg6: memref<16x256xf32, #tpu.memory_space<vmem>>) attributes {dimension_semantics = [#tpu.dimension_semantics<parallel>], iteration_bounds = array<i64: 1>, scalar_prefetch = 0 : i64, scratch_operands = 0 : i64, tpu.core_type = #tpu.core_type<tc>, window_params = [{transform_indices = @transform_0, window_bounds = array<i64: 16, 128>}, {pipeline_mode = #tpu.pipeline_mode<synchronous>, transform_indices = @transform_1, window_bounds = array<i64: 128, 512>}, {pipeline_mode = #tpu.pipeline_mode<synchronous>, transform_indices = @transform_2, window_bounds = array<i64: 1, 512>}, {pipeline_mode = #tpu.pipeline_mode<synchronous>, transform_indices = @transform_3, window_bounds = array<i64: 512, 256>}, {pipeline_mode = #tpu.pipeline_mode<synchronous>, transform_indices = @transform_4, window_bounds = array<i64: 1, 256>}, {transform_indices = @transform_5, window_bounds = array<i64: 16, 256>}]} {
    %c0 = arith.constant 0 : index
    %c0_0 = arith.constant 0 : index
    %0 = vector.load %arg1[%c0, %c0_0] : memref<16x128xbf16, #tpu.memory_space<vmem>>, vector<16x128xbf16>
    %c0_1 = arith.constant 0 : index
    %c0_2 = arith.constant 0 : index
    %1 = vector.load %arg2[%c0_1, %c0_2] : memref<128x512xbf16, #tpu.memory_space<vmem>>, vector<128x512xbf16>
    %cst = arith.constant dense<0.000000e+00> : vector<16x512xf32>
    %2 = tpu.matmul %0, %1, %cst {dimension_numbers = #tpu.dot_dimension_numbers<[1], [0], [0], [1], [0, 0, 1, 1], [], []>} : vector<16x128xbf16>, vector<128x512xbf16>, vector<16x512xf32> -> vector<16x512xf32>
    %c0_3 = arith.constant 0 : index
    %c0_4 = arith.constant 0 : index
    %3 = vector.load %arg3[%c0_3, %c0_4] : memref<1x512xf32, #tpu.memory_space<vmem>>, vector<1x512xf32>
    %4 = vector.broadcast %3 : vector<1x512xf32> to vector<16x512xf32>
    %5 = arith.addf %2, %4 : vector<16x512xf32>
    %cst_5 = arith.constant 0.000000e+00 : f32
    %6 = vector.broadcast %cst_5 : f32 to vector<16x512xf32>
    %7 = arith.maximumf %5, %6 : vector<16x512xf32>
    %8 = arith.truncf %7 : vector<16x512xf32> to vector<16x512xbf16>
    %c0_6 = arith.constant 0 : index
    %c0_7 = arith.constant 0 : index
    %9 = vector.load %arg4[%c0_6, %c0_7] : memref<512x256xbf16, #tpu.memory_space<vmem>>, vector<512x256xbf16>
    %cst_8 = arith.constant dense<0.000000e+00> : vector<16x256xf32>
    %10 = tpu.matmul %8, %9, %cst_8 {dimension_numbers = #tpu.dot_dimension_numbers<[1], [0], [0], [1], [0, 0, 1, 1], [], []>} : vector<16x512xbf16>, vector<512x256xbf16>, vector<16x256xf32> -> vector<16x256xf32>
    %c0_9 = arith.constant 0 : index
    %c0_10 = arith.constant 0 : index
    %11 = vector.load %arg5[%c0_9, %c0_10] : memref<1x256xf32, #tpu.memory_space<vmem>>, vector<1x256xf32>
    %12 = vector.broadcast %11 : vector<1x256xf32> to vector<16x256xf32>
    %13 = arith.addf %10, %12 : vector<16x256xf32>
    %c0_11 = arith.constant 0 : index
    %c0_12 = arith.constant 0 : index
    %14 = vector.load %arg6[%c0_11, %c0_12] : memref<16x256xf32, #tpu.memory_space<vmem>>, vector<16x256xf32>
    tpu.vector_store %arg6[%c0_11, %c0_12], %13 {strides = array<i32>} : memref<16x256xf32, #tpu.memory_space<vmem>>, vector<16x256xf32>,
    return
  }
  func.func @transform_0(%arg0: i32) -> (i32, i32) {
    %c0_i32 = arith.constant 0 : i32
    %c0_i32_0 = arith.constant 0 : i32
    return %arg0, %c0_i32 : i32, i32
  }
  func.func @transform_1(%arg0: i32) -> (i32, i32) {
    %c0_i32 = arith.constant 0 : i32
    %c0_i32_0 = arith.constant 0 : i32
    %c0_i32_1 = arith.constant 0 : i32
    return %c0_i32, %c0_i32_0 : i32, i32
  }
  func.func @transform_2(%arg0: i32) -> (i32, i32) {
    %c0_i32 = arith.constant 0 : i32
    %c0_i32_0 = arith.constant 0 : i32
    %c0_i32_1 = arith.constant 0 : i32
    return %c0_i32, %c0_i32_0 : i32, i32
  }
  func.func @transform_3(%arg0: i32) -> (i32, i32) {
    %c0_i32 = arith.constant 0 : i32
    %c0_i32_0 = arith.constant 0 : i32
    %c0_i32_1 = arith.constant 0 : i32
    return %c0_i32, %c0_i32_0 : i32, i32
  }
  func.func @transform_4(%arg0: i32) -> (i32, i32) {
    %c0_i32 = arith.constant 0 : i32
    %c0_i32_0 = arith.constant 0 : i32
    %c0_i32_1 = arith.constant 0 : i32
    return %c0_i32, %c0_i32_0 : i32, i32
  }
  func.func @transform_5(%arg0: i32) -> (i32, i32) {
    %c0_i32 = arith.constant 0 : i32
    %c0_i32_0 = arith.constant 0 : i32
    return %arg0, %c0_i32 : i32, i32
  }
}

</mosaic_0001>

<bundles_post_ra>
// kernel: tpu_custom_call.1
= control target key start
LH: loop header
LB: loop body
LE: loop exit
PB: predicated region body
PF: predicated region fallthrough
CT: control target
= control target key end

     0   :  { %10 = vsyncpa [#allocation3], 0  ;;  %s1343_s0 = inlined_call_operand.hbm [shape: bf16[16,128], index: 0, kind: input, shape index: {}]   ;;  %s1344_s1 = inlined_call_operand.hbm [shape: bf16[128,512], index: 1, kind: input, shape index: {}]   ;;  %s1345_s2 = inlined_call_operand.vmem [shape: f32[1,512], index: 2, kind: input, shape index: {}]   ;;  %s1346_s3 = inlined_call_operand.hbm [shape: bf16[512,256], index: 3, kind: input, shape index: {}]   ;;  %s1347_s4 = inlined_call_operand.vmem [shape: f32[1,256], index: 4, kind: input, shape index: {}]   ;;  %s1348_s5 = inlined_call_operand.hbm [shape: f32[16,256], index: 5, kind: output, shape index: {}]  }
   0x1   :  { %11 = vsyncpa [#allocation6], 0 }
   0x2   :  { %12 = vsyncpa [#allocation4], 0  ;;  %s1242_s18 = smov [#allocation5]   ;;  %s1148_s22 = scalar_lea.hbm %s1344_s1, 4096 }
   0x3   :  { %s30_s19 = sshll.u32 %s1242_s18, 4  ;;  %p1149_p0 = scmp.ne.s32.totalorder %s1344_s1, %s1148_s22  ;;  %s31_s19 = int_to_ptr.vmem [resolvable:$true] %s30_s19 }
   0x4   :  { %p1152_p1 = scmp.lt.u32.totalorder %s1148_s22, %s1344_s1 }
   0x6   :  { %p1154_p2 = pnand %p1152_p1, %p1149_p0 }
   0x8   :  { %1157 = shalt.err (!%p1154_p2)
}
   0x9   :  { %s1158_s27 = scalar_lea.vmem %s31_s19, 4096  ;;  %p1163_p4 = scmp.lt.s32.totalorder %s31_s19, %s31_s19 }
   0xa   :  { %p1159_p3 = scmp.ne.s32.totalorder %s31_s19, %s1158_s27  ;;  %p1164_p5 = scmp.lt.s32.totalorder %s1158_s27, %s1158_s27 }
   0xc   :  { %p1165_p6 = por %p1164_p5, %p1163_p4 }
   0xe   :  { %p1166_p7 = pnand %p1165_p6, %p1159_p3 }
  0x10   :  { %1169 = shalt.err (!%p1166_p7)
}
  0x11   :  { %s1243_s28 = smov 256   ;;  %s1244_s29 = smov 16  }
  0x12   :  { %36 = dma.hbm_to_vmem [thread:$0]  %s1344_s1, 4096, %s31_s19, [#allocation6], %s1243_s28, %s1243_s28, %s1244_s29  }
  0x13   :  { %s1245_s7 = smov [#allocation2]   ;;  %s1170_s11 = scalar_lea.hbm %s1343_s0, 128 }
  0x14   :  { %s18_s8 = sshll.u32 %s1245_s7, 4  ;;  %p1171_p8 = scmp.ne.s32.totalorder %s1343_s0, %s1170_s11  ;;  %s19_s8 = int_to_ptr.vmem [resolvable:$true] %s18_s8 }
  0x15   :  { %p1174_p9 = scmp.lt.u32.totalorder %s1170_s11, %s1343_s0 }
  0x17   :  { %p1176_p10 = pnand %p1174_p9, %p1171_p8 }
  0x19   :  { %1179 = shalt.err (!%p1176_p10)
}
  0x1a   :  { %s1180_s16 = scalar_lea.vmem %s19_s8, 128  ;;  %p1185_p12 = scmp.lt.s32.totalorder %s19_s8, %s19_s8 }
  0x1b   :  { %p1181_p11 = scmp.ne.s32.totalorder %s19_s8, %s1180_s16  ;;  %p1186_p13 = scmp.lt.s32.totalorder %s1180_s16, %s1180_s16 }
  0x1d   :  { %p1187_p0 = por %p1186_p13, %p1185_p12 }
  0x1f   :  { %p1188_p1 = pnand %p1187_p0, %p1181_p11 }
  0x21   :  { %1191 = shalt.err (!%p1188_p1)
}
  0x22   :  { %s1246_s1 = smov 64   ;;  %s1247_s17 = smov 4  }
  0x23   :  { %24 = dma.hbm_to_vmem [thread:$0]  %s1343_s0, 128, %s19_s8, [#allocation3], %s1246_s1, %s1246_s1, %s1247_s17  }
  0x24   :  { %s1248_s20 = smov [#allocation7]   ;;  %s1192_s24 = scalar_lea.hbm %s1346_s3, 8192 }
  0x25   :  { %s44_s21 = sshll.u32 %s1248_s20, 4  ;;  %p1193_p2 = scmp.ne.s32.totalorder %s1346_s3, %s1192_s24  ;;  %s45_s21 = int_to_ptr.vmem [resolvable:$true] %s44_s21 }
  0x26   :  { %p1196_p3 = scmp.lt.u32.totalorder %s1192_s24, %s1346_s3 }
  0x28   :  { %p1198_p4 = pnand %p1196_p3, %p1193_p2 }
  0x2a   :  { %1201 = shalt.err (!%p1198_p4)
}
  0x2b   :  { %s1202_s6 = scalar_lea.vmem %s45_s21, 8192  ;;  %p1207_p6 = scmp.lt.s32.totalorder %s45_s21, %s45_s21 }
  0x2c   :  { %p1203_p5 = scmp.ne.s32.totalorder %s45_s21, %s1202_s6  ;;  %p1208_p7 = scmp.lt.s32.totalorder %s1202_s6, %s1202_s6 }
  0x2e   :  { %p1209_p8 = por %p1208_p7, %p1207_p6 }
  0x30   :  { %p1210_p9 = pnand %p1209_p8, %p1203_p5 }
  0x32   :  { %1213 = shalt.err (!%p1210_p9)
}
  0x33   :  { %s1249_s0 = smov 128   ;;  %s1250_s7 = smov 8  }
  0x34   :  { %50 = dma.hbm_to_vmem [thread:$0]  %s1346_s3, 8192, %s45_s21, [#allocation6], %s1249_s0, %s1249_s0, %s1250_s7  }
  0x35   :  { %1236 = dma.done.wait [#allocation3], 128  }
  0x36   :  { %1237 = vsyncadd [#allocation3], 4294967168 }
  0x37   :  { %1238 = dma.done.wait [#allocation6], 12288  }
  0x38   :  { %1239 = vsyncadd [#allocation6], 4294955008  ;;  %v1251_v0 = vmov 0   ;;  %v1003_v1 = vld [vmem:[#allocation5 + $0x4] ss:$16 sps:$4 sm:$0xff]   ;;  %v1051_v35 = vld [vmem:[#allocation2] sm:$0xff]  }
  0x39   :  { %317 = vmatprep.mubr.bf16.mxu0 %v1251_v0  ;;  %360 = vmatprep.mubr.bf16.mxu1 %v1251_v0  ;;  %v1005_v2 = vld [vmem:[#allocation5 + $0xc] ss:$16 sps:$4 sm:$0xff]   ;;  %v1007_v3 = vld [vmem:[#allocation5] ss:$16 sps:$4 sm:$0xff]   ;;  %v1008_v4 = vld [vmem:[#allocation5 + $0x8] ss:$16 sps:$4 sm:$0xff]  }
  0x3a   :  { %285 = vmatprep.subr.bf16.mxu0 %v1003_v1  ;;  %328 = vmatprep.subr.bf16.mxu1 %v1005_v2  ;;  %v1009_v5 = vld [vmem:[#allocation5 + $0x24] ss:$16 sps:$4 sm:$0xff]   ;;  %v1011_v6 = vld [vmem:[#allocation5 + $0x2c] ss:$16 sps:$4 sm:$0xff]   ;;  %v1013_v7 = vld [vmem:[#allocation5 + $0x20] ss:$16 sps:$4 sm:$0xff]  }
  0x3b   :  { %286 = vmatpush1.bf16.msra.mxu0 %v1007_v3  ;;  %329 = vmatpush1.bf16.msra.mxu1 %v1008_v4  ;;  %v1014_v8 = vld [vmem:[#allocation5 + $0x28] ss:$16 sps:$4 sm:$0xff]   ;;  %v1015_v9 = vld [vmem:[#allocation5 + $0x44] ss:$16 sps:$4 sm:$0xff]   ;;  %v1017_v10 = vld [vmem:[#allocation5 + $0x4c] ss:$16 sps:$4 sm:$0xff]  }
  0x3c   :  { %287 = vmatprep.subr.bf16.mxu0 %v1009_v5  ;;  %330 = vmatprep.subr.bf16.mxu1 %v1011_v6  ;;  %v1019_v11 = vld [vmem:[#allocation5 + $0x40] ss:$16 sps:$4 sm:$0xff]   ;;  %v1020_v12 = vld [vmem:[#allocation5 + $0x48] ss:$16 sps:$4 sm:$0xff]   ;;  %v1021_v13 = vld [vmem:[#allocation5 + $0x64] ss:$16 sps:$4 sm:$0xff]  }
  0x3d   :  { %v1023_v14 = vld [vmem:[#allocation5 + $0x6c] ss:$16 sps:$4 sm:$0xff]   ;;  %v1025_v15 = vld [vmem:[#allocation5 + $0x60] ss:$16 sps:$4 sm:$0xff]   ;;  %v1026_v16 = vld [vmem:[#allocation5 + $0x68] ss:$16 sps:$4 sm:$0xff]  }
  0x3e   :  { %v1027_v17 = vld [vmem:[#allocation5 + $0x84] ss:$16 sps:$4 sm:$0xff]   ;;  %v1029_v18 = vld [vmem:[#allocation5 + $0x8c] ss:$16 sps:$4 sm:$0xff]   ;;  %v1031_v19 = vld [vmem:[#allocation5 + $0x80] ss:$16 sps:$4 sm:$0xff]  }
  0x3f   :  { %288 = vmatpush1.bf16.msra.mxu0 %v1013_v7  ;;  %331 = vmatpush1.bf16.msra.mxu1 %v1014_v8  ;;  %v1032_v20 = vld [vmem:[#allocation5 + $0x88] ss:$16 sps:$4 sm:$0xff]   ;;  %v1033_v21 = vld [vmem:[#allocation5 + $0xa4] ss:$16 sps:$4 sm:$0xff]   ;;  %v1035_v22 = vld [vmem:[#allocation5 + $0xac] ss:$16 sps:$4 sm:$0xff]  }
  0x40   :  { %289 = vmatprep.subr.bf16.mxu0 %v1015_v9  ;;  %332 = vmatprep.subr.bf16.mxu1 %v1017_v10  ;;  %v1037_v23 = vld [vmem:[#allocation5 + $0xa0] ss:$16 sps:$4 sm:$0xff]   ;;  %v1038_v24 = vld [vmem:[#allocation5 + $0xa8] ss:$16 sps:$4 sm:$0xff]   ;;  %v1039_v25 = vld [vmem:[#allocation5 + $0xc4] ss:$16 sps:$4 sm:$0xff]  }
  0x41   :  { %v1041_v26 = vld [vmem:[#allocation5 + $0xcc] ss:$16 sps:$4 sm:$0xff]   ;;  %v1043_v27 = vld [vmem:[#allocation5 + $0xc0] ss:$16 sps:$4 sm:$0xff]   ;;  %v1044_v28 = vld [vmem:[#allocation5 + $0xc8] ss:$16 sps:$4 sm:$0xff]  }
  0x42   :  { %v1045_v29 = vld [vmem:[#allocation5 + $0xe4] ss:$16 sps:$4 sm:$0xff]   ;;  %v1047_v30 = vld [vmem:[#allocation5 + $0xec] ss:$16 sps:$4 sm:$0xff]   ;;  %v1049_v31 = vld [vmem:[#allocation5 + $0xe0] ss:$16 sps:$4 sm:$0xff]  }
  0x43   :  { %290 = vmatpush1.bf16.msra.mxu0 %v1019_v11  ;;  %333 = vmatpush1.bf16.msra.mxu1 %v1020_v12  ;;  %v1050_v32 = vld [vmem:[#allocation5 + $0xe8] ss:$16 sps:$4 sm:$0xff]   ;;  %v1054_v33 = vld [vmem:[#allocation7 + $0x4] ss:$8 sps:$4 sm:$0xff]   ;;  %v1060_v38 = vld [vmem:[#allocation7 + $0x14] ss:$8 sps:$4 sm:$0xff]  }
  0x44   :  { %291 = vmatprep.subr.bf16.mxu0 %v1021_v13  ;;  %334 = vmatprep.subr.bf16.mxu1 %v1023_v14  ;;  %v1057_v34 = vld [vmem:[#allocation7 + $0x104] ss:$8 sps:$4 sm:$0xff]   ;;  %v1052_v36 = vld [vmem:[#allocation7] ss:$8 sps:$4 sm:$0xff]   ;;  %v1063_v39 = vld [vmem:[#allocation7 + $0x114] ss:$8 sps:$4 sm:$0xff]  }
  0x45   :  { %v1055_v37 = vld [vmem:[#allocation7 + $0x100] ss:$8 sps:$4 sm:$0xff]   ;;  %v1058_v40 = vld [vmem:[#allocation7 + $0x10] ss:$8 sps:$4 sm:$0xff]   ;;  %v1066_v42 = vld [vmem:[#allocation7 + $0x24] ss:$8 sps:$4 sm:$0xff]  }
  0x46   :  { %v1061_v41 = vld [vmem:[#allocation7 + $0x110] ss:$8 sps:$4 sm:$0xff]   ;;  %v1069_v43 = vld [vmem:[#allocation7 + $0x124] ss:$8 sps:$4 sm:$0xff]   ;;  %v1064_v44 = vld [vmem:[#allocation7 + $0x20] ss:$8 sps:$4 sm:$0xff]  }
  0x47   :  { %292 = vmatpush1.bf16.msra.mxu0 %v1025_v15  ;;  %335 = vmatpush1.bf16.msra.mxu1 %v1026_v16  ;;  %v1067_v45 = vld [vmem:[#allocation7 + $0x120] ss:$8 sps:$4 sm:$0xff]   ;;  %v1072_v46 = vld [vmem:[#allocation7 + $0x34] ss:$8 sps:$4 sm:$0xff]   ;;  %v1070_v48 = vld [vmem:[#allocation7 + $0x30] ss:$8 sps:$4 sm:$0xff]  }
  0x48   :  { %293 = vmatprep.subr.bf16.mxu0 %v1027_v17  ;;  %336 = vmatprep.subr.bf16.mxu1 %v1029_v18  ;;  %v1075_v47 = vld [vmem:[#allocation7 + $0x134] ss:$8 sps:$4 sm:$0xff]   ;;  %v1073_v49 = vld [vmem:[#allocation7 + $0x130] ss:$8 sps:$4 sm:$0xff]   ;;  %v1078_v50 = vld [vmem:[#allocation7 + $0x44] ss:$8 sps:$4 sm:$0xff]  }
  0x49   :  { %v1081_v51 = vld [vmem:[#allocation7 + $0x144] ss:$8 sps:$4 sm:$0xff]   ;;  %v1076_v52 = vld [vmem:[#allocation7 + $0x40] ss:$8 sps:$4 sm:$0xff]   ;;  %v1084_v54 = vld [vmem:[#allocation7 + $0x54] ss:$8 sps:$4 sm:$0xff]  }
  0x4a   :  { %v1079_v53 = vld [vmem:[#allocation7 + $0x140] ss:$8 sps:$4 sm:$0xff]   ;;  %v1087_v55 = vld [vmem:[#allocation7 + $0x154] ss:$8 sps:$4 sm:$0xff]   ;;  %v1082_v56 = vld [vmem:[#allocation7 + $0x50] ss:$8 sps:$4 sm:$0xff]  }
  0x4b   :  { %294 = vmatpush1.bf16.msra.mxu0 %v1031_v19  ;;  %337 = vmatpush1.bf16.msra.mxu1 %v1032_v20  ;;  %v1085_v57 = vld [vmem:[#allocation7 + $0x150] ss:$8 sps:$4 sm:$0xff]   ;;  %v1090_v58 = vld [vmem:[#allocation7 + $0x64] ss:$8 sps:$4 sm:$0xff]   ;;  %v1088_v60 = vld [vmem:[#allocation7 + $0x60] ss:$8 sps:$4 sm:$0xff]  }
  0x4c   :  { %295 = vmatprep.subr.bf16.mxu0 %v1033_v21  ;;  %338 = vmatprep.subr.bf16.mxu1 %v1035_v22  ;;  %v1093_v59 = vld [vmem:[#allocation7 + $0x164] ss:$8 sps:$4 sm:$0xff]   ;;  %v1091_v61 = vld [vmem:[#allocation7 + $0x160] ss:$8 sps:$4 sm:$0xff]   ;;  %v1096_v62 = vld [vmem:[#allocation7 + $0x74] ss:$8 sps:$4 sm:$0xff]  }
  0x4d   :  { %v1099_v63 = vld [vmem:[#allocation7 + $0x174] ss:$8 sps:$4 sm:$0xff]   ;;  %v1094_v0 = vld [vmem:[#allocation7 + $0x70] ss:$8 sps:$4 sm:$0xff]   ;;  %v1102_v2 = vld [vmem:[#allocation7 + $0x84] ss:$8 sps:$4 sm:$0xff]  }
  0x4e   :  { %v1097_v1 = vld [vmem:[#allocation7 + $0x170] ss:$8 sps:$4 sm:$0xff]   ;;  %v1105_v3 = vld [vmem:[#allocation7 + $0x184] ss:$8 sps:$4 sm:$0xff]   ;;  %v1100_v4 = vld [vmem:[#allocation7 + $0x80] ss:$8 sps:$4 sm:$0xff]  }
  0x4f   :  { %296 = vmatpush1.bf16.msra.mxu0 %v1037_v23  ;;  %339 = vmatpush1.bf16.msra.mxu1 %v1038_v24  ;;  %v1103_v5 = vld [vmem:[#allocation7 + $0x180] ss:$8 sps:$4 sm:$0xff]   ;;  %v1108_v6 = vld [vmem:[#allocation7 + $0x94] ss:$8 sps:$4 sm:$0xff]   ;;  %v1106_v8 = vld [vmem:[#allocation7 + $0x90] ss:$8 sps:$4 sm:$0xff]  }
  0x50   :  { %297 = vmatprep.subr.bf16.mxu0 %v1039_v25  ;;  %340 = vmatprep.subr.bf16.mxu1 %v1041_v26  ;;  %v1111_v7 = vld [vmem:[#allocation7 + $0x194] ss:$8 sps:$4 sm:$0xff]   ;;  %v1109_v9 = vld [vmem:[#allocation7 + $0x190] ss:$8 sps:$4 sm:$0xff]   ;;  %v1114_v10 = vld [vmem:[#allocation7 + $0xa4] ss:$8 sps:$4 sm:$0xff]  }
  0x51   :  { %v1117_v11 = vld [vmem:[#allocation7 + $0x1a4] ss:$8 sps:$4 sm:$0xff]   ;;  %v1112_v12 = vld [vmem:[#allocation7 + $0xa0] ss:$8 sps:$4 sm:$0xff]   ;;  %v1120_v14 = vld [vmem:[#allocation7 + $0xb4] ss:$8 sps:$4 sm:$0xff]  }
  0x52   :  { %v1115_v13 = vld [vmem:[#allocation7 + $0x1a0] ss:$8 sps:$4 sm:$0xff]   ;;  %v1123_v15 = vld [vmem:[#allocation7 + $0x1b4] ss:$8 sps:$4 sm:$0xff]   ;;  %v1118_v16 = vld [vmem:[#allocation7 + $0xb0] ss:$8 sps:$4 sm:$0xff]  }
  0x53   :  { %298 = vmatpush1.bf16.msra.mxu0 %v1043_v27  ;;  %341 = vmatpush1.bf16.msra.mxu1 %v1044_v28  ;;  %v1121_v17 = vld [vmem:[#allocation7 + $0x1b0] ss:$8 sps:$4 sm:$0xff]   ;;  %v1126_v18 = vld [vmem:[#allocation7 + $0xc4] ss:$8 sps:$4 sm:$0xff]   ;;  %v1124_v20 = vld [vmem:[#allocation7 + $0xc0] ss:$8 sps:$4 sm:$0xff]  }
  0x54   :  { %299 = vmatprep.subr.bf16.mxu0 %v1045_v29  ;;  %342 = vmatprep.subr.bf16.mxu1 %v1047_v30  ;;  %v1129_v19 = vld [vmem:[#allocation7 + $0x1c4] ss:$8 sps:$4 sm:$0xff]   ;;  %v1127_v21 = vld [vmem:[#allocation7 + $0x1c0] ss:$8 sps:$4 sm:$0xff]   ;;  %v1132_v22 = vld [vmem:[#allocation7 + $0xd4] ss:$8 sps:$4 sm:$0xff]  }
  0x55   :  { %v1135_v23 = vld [vmem:[#allocation7 + $0x1d4] ss:$8 sps:$4 sm:$0xff]   ;;  %v1130_v24 = vld [vmem:[#allocation7 + $0xd0] ss:$8 sps:$4 sm:$0xff]   ;;  %v1138_v26 = vld [vmem:[#allocation7 + $0xe4] ss:$8 sps:$4 sm:$0xff]  }
  0x56   :  { %v1133_v25 = vld [vmem:[#allocation7 + $0x1d0] ss:$8 sps:$4 sm:$0xff]   ;;  %v1141_v27 = vld [vmem:[#allocation7 + $0x1e4] ss:$8 sps:$4 sm:$0xff]   ;;  %v1136_v28 = vld [vmem:[#allocation7 + $0xe0] ss:$8 sps:$4 sm:$0xff]  }
  0x57   :  { %300 = vmatpush1.bf16.msra.mxu0 %v1049_v31  ;;  %343 = vmatpush1.bf16.msra.mxu1 %v1050_v32  ;;  %v1139_v29 = vld [vmem:[#allocation7 + $0x1e0] ss:$8 sps:$4 sm:$0xff]   ;;  %v1144_v30 = vld [vmem:[#allocation7 + $0xf4] ss:$8 sps:$4 sm:$0xff]   ;;  %v1142_v32 = vld [vmem:[#allocation7 + $0xf0] ss:$8 sps:$4 sm:$0xff]  }
  0x58   :  { %779 = vmatprep.subr.bf16.mxu1 %v1054_v33  ;;  %822 = vmatprep.subr.bf16.mxu0 %v1057_v34  ;;  %v1147_v31 = vld [vmem:[#allocation7 + $0x1f4] ss:$8 sps:$4 sm:$0xff]   ;;  %v1145_v33 = vld [vmem:[#allocation7 + $0x1f0] ss:$8 sps:$4 sm:$0xff]   ;;  %v99_v34 = vlaneseq  ;;  %s1252_s12 = smov [#allocation8]  }
  0x59   :  { %s874_s13 = sshll.u32 %s1252_s12, 4  ;;  %s875_s13 = int_to_ptr.vmem [resolvable:$true] %s874_s13 }
  0x5a   :  { %318 = vmatmul.mubr.bf16.vlgmr.msra.gmra.mrb[0].mxu0 %v1051_v35  ;;  %361 = vmatmul.mubr.bf16.vlgmr.msra.gmra.mrb[0].mxu1 %v1051_v35  ;;  %v100_v35 = vshrl.u32 %v99_v34, 7  ;;  %p1219_p11 = scmp.lt.s32.totalorder %s875_s13, %s875_s13 }
  0x5b   :  { %780 = vmatpush1.bf16.msra.mxu1 %v1052_v36  ;;  %823 = vmatpush1.bf16.msra.mxu0 %v1055_v37 }
  0x5c   :  { %781 = vmatprep.subr.bf16.mxu1 %v1060_v38  ;;  %824 = vmatprep.subr.bf16.mxu0 %v1063_v39  ;;  %v101_v36 = vsub.s32 0, %v100_v35  ;;  %v109_v37 = vsub.s32 2, %v100_v35  ;;  %v97_v38 = vld [vmem:[%s1345_s2] sm:$0xf]  ;;  %v105_v39 = vsub.s32 1, %v100_v35 }
  0x5f   :  { %782 = vmatpush1.bf16.msra.mxu1 %v1058_v40  ;;  %825 = vmatpush1.bf16.msra.mxu0 %v1061_v41  ;;  %v113_v40 = vsub.s32 3, %v100_v35  ;;  %v102_v41 = vrot.slane %v97_v38, %v101_v36 }
  0x60   :  { %783 = vmatprep.subr.bf16.mxu1 %v1066_v42  ;;  %826 = vmatprep.subr.bf16.mxu0 %v1069_v43  ;;  %v110_v42 = vrot.slane %v97_v38, %v109_v37  ;;  %v106_v43 = vrot.slane %v97_v38, %v105_v39 }
  0x63   :  { %784 = vmatpush1.bf16.msra.mxu1 %v1064_v44  ;;  %827 = vmatpush1.bf16.msra.mxu0 %v1067_v45  ;;  %v114_v44 = vrot.slane %v97_v38, %v113_v40 }
  0x64   :  { %785 = vmatprep.subr.bf16.mxu1 %v1072_v46  ;;  %828 = vmatprep.subr.bf16.mxu0 %v1075_v47 }
  0x67   :  { %786 = vmatpush1.bf16.msra.mxu1 %v1070_v48  ;;  %829 = vmatpush1.bf16.msra.mxu0 %v1073_v49 }
  0x68   :  { %787 = vmatprep.subr.bf16.mxu1 %v1078_v50  ;;  %830 = vmatprep.subr.bf16.mxu0 %v1081_v51 }
  0x6b   :  { %788 = vmatpush1.bf16.msra.mxu1 %v1076_v52  ;;  %831 = vmatpush1.bf16.msra.mxu0 %v1079_v53 }
  0x6c   :  { %789 = vmatprep.subr.bf16.mxu1 %v1084_v54  ;;  %832 = vmatprep.subr.bf16.mxu0 %v1087_v55 }
  0x6f   :  { %790 = vmatpush1.bf16.msra.mxu1 %v1082_v56  ;;  %833 = vmatpush1.bf16.msra.mxu0 %v1085_v57 }
  0x70   :  { %791 = vmatprep.subr.bf16.mxu1 %v1090_v58  ;;  %834 = vmatprep.subr.bf16.mxu0 %v1093_v59 }
  0x73   :  { %792 = vmatpush1.bf16.msra.mxu1 %v1088_v60  ;;  %835 = vmatpush1.bf16.msra.mxu0 %v1091_v61 }
  0x74   :  { %793 = vmatprep.subr.bf16.mxu1 %v1096_v62  ;;  %836 = vmatprep.subr.bf16.mxu0 %v1099_v63 }
  0x77   :  { %794 = vmatpush1.bf16.msra.mxu1 %v1094_v0  ;;  %837 = vmatpush1.bf16.msra.mxu0 %v1097_v1 }
  0x78   :  { %795 = vmatprep.subr.bf16.mxu1 %v1102_v2  ;;  %838 = vmatprep.subr.bf16.mxu0 %v1105_v3 }
  0x7b   :  { %796 = vmatpush1.bf16.msra.mxu1 %v1100_v4  ;;  %839 = vmatpush1.bf16.msra.mxu0 %v1103_v5 }
  0x7c   :  { %797 = vmatprep.subr.bf16.mxu1 %v1108_v6  ;;  %840 = vmatprep.subr.bf16.mxu0 %v1111_v7 }
  0x7f   :  { %798 = vmatpush1.bf16.msra.mxu1 %v1106_v8  ;;  %841 = vmatpush1.bf16.msra.mxu0 %v1109_v9  ;;  %v447_v9 = vld [vmem:[%s1347_s4] sm:$0x3]  ;;  %s1214_s4 = scalar_lea.vmem %s875_s13, 512 }
  0x80   :  { %799 = vmatprep.subr.bf16.mxu1 %v1114_v10  ;;  %842 = vmatprep.subr.bf16.mxu0 %v1117_v11  ;;  %v452_v10 = vrot.slane %v447_v9, %v101_v36  ;;  %v456_v11 = vrot.slane %v447_v9, %v105_v39  ;;  %p1215_p10 = scmp.ne.s32.totalorder %s875_s13, %s1214_s4  ;;  %p1220_p12 = scmp.lt.s32.totalorder %s1214_s4, %s1214_s4 }
  0x82   :  { %p1221_p13 = por %p1220_p12, %p1219_p11 }
  0x83   :  { %800 = vmatpush1.bf16.msra.mxu1 %v1112_v12  ;;  %843 = vmatpush1.bf16.msra.mxu0 %v1115_v13 }
  0x84   :  { %801 = vmatprep.subr.bf16.mxu1 %v1120_v14  ;;  %844 = vmatprep.subr.bf16.mxu0 %v1123_v15  ;;  %p1222_p0 = pnand %p1221_p13, %p1215_p10 }
  0x87   :  { %802 = vmatpush1.bf16.msra.mxu1 %v1118_v16  ;;  %845 = vmatpush1.bf16.msra.mxu0 %v1121_v17 }
  0x88   :  { %803 = vmatprep.subr.bf16.mxu1 %v1126_v18  ;;  %846 = vmatprep.subr.bf16.mxu0 %v1129_v19 }
  0x8b   :  { %804 = vmatpush1.bf16.msra.mxu1 %v1124_v20  ;;  %847 = vmatpush1.bf16.msra.mxu0 %v1127_v21 }
  0x8c   :  { %805 = vmatprep.subr.bf16.mxu1 %v1132_v22  ;;  %848 = vmatprep.subr.bf16.mxu0 %v1135_v23 }
  0x8f   :  { %806 = vmatpush1.bf16.msra.mxu1 %v1130_v24  ;;  %849 = vmatpush1.bf16.msra.mxu0 %v1133_v25 }
  0x90   :  { %807 = vmatprep.subr.bf16.mxu1 %v1138_v26  ;;  %850 = vmatprep.subr.bf16.mxu0 %v1141_v27 }
  0x93   :  { %808 = vmatpush1.bf16.msra.mxu1 %v1136_v28  ;;  %851 = vmatpush1.bf16.msra.mxu0 %v1139_v29 }
  0x94   :  { %809 = vmatprep.subr.bf16.mxu1 %v1144_v30  ;;  %852 = vmatprep.subr.bf16.mxu0 %v1147_v31 }
  0x97   :  { %810 = vmatpush1.bf16.msra.mxu1 %v1142_v32  ;;  %853 = vmatpush1.bf16.msra.mxu0 %v1145_v33 }
 0x12d   :  { %v319_v45 = vpop.f32.mrb[0].mxu0  ;;  %v362_v46 = vpop.f32.mrb[0].mxu1 }
 0x12e   :  { %v320_v47 = vadd.f32 %v319_v45, %v102_v41  ;;  %v363_v48 = vadd.f32 %v362_v46, %v110_v42  ;;  %v321_v49 = vpop.f32.mrb[1].mxu0  ;;  %v364_v50 = vpop.f32.mrb[1].mxu1 }
 0x12f   :  { %v322_v51 = vadd.f32 %v321_v49, %v106_v43  ;;  %v365_v52 = vadd.f32 %v364_v50, %v114_v44  ;;  %v323_v53 = vpop.f32.mrb[2].mxu0  ;;  %v366_v54 = vpop.f32.mrb[2].mxu1 }
 0x130   :  { %v373_v55 = vmax.f32 %v363_v48, 0.0  ;;  %v324_v56 = vadd.f32 %v323_v53, %v102_v41  ;;  %v367_v57 = vadd.f32 %v366_v54, %v110_v42  ;;  %v325_v58 = vpop.f32.mrb[3].mxu0  ;;  %v368_v59 = vpop.f32.mrb[3].mxu1  ;;  %v371_v63 = vmax.f32 %v320_v47, 0.0 }
 0x131   :  { %v374_v60 = vmax.f32 %v365_v52, 0.0  ;;  %v326_v61 = vadd.f32 %v325_v58, %v106_v43  ;;  %v369_v62 = vadd.f32 %v368_v59, %v114_v44  ;;  %v372_v2 = vmax.f32 %v322_v51, 0.0 }
 0x132   :  { %v375_v0 = vmax.f32 %v324_v56, 0.0  ;;  %v377_v1 = vmax.f32 %v367_v57, 0.0 }
 0x133   :  { %v376_v3 = vmax.f32 %v326_v61, 0.0  ;;  %v378_v4 = vmax.f32 %v369_v62, 0.0 }
 0x134   :  { %v379_v5 = vpack.c.bf16 %v375_v0, %v371_v63  ;;  %v381_v6 = vpack.c.bf16 %v377_v1, %v373_v55 }
 0x135   :  { %v380_v7 = vpack.c.bf16 %v376_v3, %v372_v2  ;;  %v382_v8 = vpack.c.bf16 %v378_v4, %v374_v60 }
 0x137   :  { %811 = vmatprep.mubr.bf16.mxu1 %v380_v7  ;;  %854 = vmatprep.mubr.bf16.mxu0 %v382_v8 }
 0x138   :  { %812 = vmatmul.mubr.bf16.vlgmr.msra.gmra.mrb[4].mxu1 %v379_v5  ;;  %855 = vmatmul.mubr.bf16.vlgmr.msra.gmra.mrb[4].mxu0 %v381_v6 }
 0x20b   :  { %v813_v12 = vpop.f32.mrb[4].mxu1  ;;  %v856_v13 = vpop.f32.mrb[4].mxu0 }
 0x20c   :  { %v814_v14 = vadd.f32 %v813_v12, %v452_v10  ;;  %v815_v15 = vpop.f32.mrb[5].mxu1  ;;  %v858_v16 = vpop.f32.mrb[5].mxu0 }
 0x20d   :  { %v816_v17 = vadd.f32 %v815_v15, %v456_v11  ;;  %v817_v18 = vpop.f32.mrb[6].mxu1  ;;  %v860_v19 = vpop.f32.mrb[6].mxu0 }
 0x20e   :  { %v857_v20 = vadd.f32 %v856_v13, %v814_v14  ;;  %v818_v21 = vadd.f32 %v817_v18, %v452_v10  ;;  %v819_v22 = vpop.f32.mrb[7].mxu1  ;;  %v862_v23 = vpop.f32.mrb[7].mxu0 }
 0x20f   :  { %v859_v24 = vadd.f32 %v858_v16, %v816_v17  ;;  %v820_v25 = vadd.f32 %v819_v22, %v456_v11 }
 0x210   :  { %865 = vst [vmem:[#allocation8] sm:$0xff] %v857_v20  ;;  %v861_v26 = vadd.f32 %v860_v19, %v818_v21 }
 0x211   :  { %866 = vst [vmem:[#allocation8 + $0x8] sm:$0xff] %v859_v24  ;;  %v863_v27 = vadd.f32 %v862_v23, %v820_v25 }
 0x212   :  { %867 = vst [vmem:[#allocation8 + $0x10] sm:$0xff] %v861_v26 }
 0x213   :  { %868 = vst [vmem:[#allocation8 + $0x18] sm:$0xff] %v863_v27 }
 0x214   :  { %1225 = shalt.err (!%p1222_p0)
}
 0x215   :  { %s1226_s16 = scalar_lea.hbm %s1348_s5, 512 }
 0x216   :  { %p1227_p1 = scmp.ne.s32.totalorder %s1348_s5, %s1226_s16  ;;  %p1230_p2 = scmp.lt.u32.totalorder %s1226_s16, %s1348_s5 }
 0x218   :  { %p1232_p3 = pnand %p1230_p2, %p1227_p1 }
 0x21a   :  { %1235 = shalt.err (!%p1232_p3)
}
 0x21b   :  { %880 = dma.vmem_to_hbm [thread:$0]  %s875_s13, 512, %s1348_s5, [#allocation4], %s1243_s28, %s1243_s28, %s1244_s29  }
 0x21c   :  { %1240 = dma.done.wait [#allocation4], 512  }
 0x21d   :  { %1241 = vsyncadd [#allocation4], 4294966784 }
 0x21e   :  { %884 = vsyncpa [#allocation3], 1 }
 0x21f   :  { %885 = vsyncpa [#allocation6], 1 }
 0x220   :  { %886 = vsyncpa [#allocation4], 1 }

</bundles_post_ra>
